<compile_context>
chip_gen: v5e
topology: v5e:2x2
jax: 0.10.0
libtpu: 0.0.40
codegen_flags: <defaults>
</compile_context>

<pallas_src>
import jax
import jax.numpy as jnp
from jax.experimental import pallas as pl
from jax.experimental.pallas import tpu as pltpu


# --------------------------------------------------------------------------
# Kernels
# --------------------------------------------------------------------------
def _unscale_kernel_row_params(p_ref, x_ref, o_ref):
    # p_ref: (TR, 2) f32 — column 0 = bias, column 1 = 1/weight (per row).
    # x_ref, o_ref: (TR, TL) tiles of the (N*C, H*W) view.
    p = p_ref[...]
    b = p[:, 0:1]                      # (TR, 1)
    inv_w = p[:, 1:2]                  # (TR, 1)
    x = x_ref[...].astype(jnp.float32)
    o_ref[...] = ((x - b) * inv_w).astype(o_ref.dtype)   # lane broadcast


def _unscale_kernel_lane_params(p_ref, x_ref, o_ref):
    # p_ref: (2, TL) f32 — row 0 = bias, row 1 = 1/weight (per lane).
    # x_ref, o_ref: (TR, TL) tiles of the (N, C*H*W) view.
    p = p_ref[...]
    b = p[0:1, :]                      # (1, TL)
    inv_w = p[1:2, :]                  # (1, TL)
    x = x_ref[...].astype(jnp.float32)
    o_ref[...] = ((x - b) * inv_w).astype(o_ref.dtype)   # sublane broadcast


# --------------------------------------------------------------------------
# Tiling helpers
# --------------------------------------------------------------------------
def _default_max_tile_bytes():
    """Per-generation tile budget (counted at f32 width)."""
    try:
        info = pltpu.get_tpu_info()
        vmem = int(getattr(info, "vmem_capacity_bytes", 0) or 0)
        if 0 < vmem <= (64 << 20):     # v7x: 64 MiB VMEM, ~3.2 TB/s HBM
            return 4 << 20             #  -> bigger tiles to amortize step cost
    except Exception:
        pass
    return 2 << 20                     # v5e / v6e / unknown: conservative


def _choose_tiles(R, L, itemsize, max_tile_bytes, min_steps=4):
    """Pick a (TR, TL) block for the flattened (R, L) elementwise op.

    Block dims obey the TPU rule: multiple of (sub, 128) or the full extent.
    `sub` is the dtype-native sublane packing (8 f32 / 16 bf16 / 32 int8).
    The element budget is counted at f32 width so the in-kernel f32 upcast of
    low-precision inputs also stays within budget (v5e-safe).
    """
    sub = max(8, 32 // itemsize)
    budget_item = max(4, itemsize)
    max_elems = max(sub * 128, max_tile_bytes // budget_item)

    if R * L <= max_elems:
        TR, TL = R, L                                   # one tile holds it all
    elif R <= sub:
        TR = R                                          # rows stay full extent
        TL = max(128, (max_elems // max(R, 1) // 128) * 128)
    elif sub * L <= max_elems:
        TL = L                                          # full, contiguous lanes
        TR = max(sub, (max_elems // L // sub) * sub)
    else:
        TR = sub
        TL = max(128, (max_elems // sub // 128) * 128)

    # Megacore guard: make sure the "parallel" grid has work for 2 TCs (v7x),
    # without violating (sub, 128) divisibility.  Only triggers for tiny inputs.
    def n_steps(tr, tl):
        return pl.cdiv(R, tr) * pl.cdiv(L, tl)

    while n_steps(TR, TL) < min_steps:
        tl_half = ((TL // 2) // 128) * 128
        tr_half = ((TR // 2) // sub) * sub
        if tl_half >= 128:
            TL = tl_half
        elif tr_half >= sub:
            TR = tr_half
        else:
            break
    return TR, TL


def _vmem_limit_bytes(TR, TL, itemsize, param_block_bytes):
    tile_in = TR * TL * itemsize
    tile_f32 = TR * TL * 4
    # 2 double-buffered I/O streams (x in, y out) + f32 temporaries allowance
    # + double-buffered param blocks + fixed headroom.
    limit = 2 * (2 * tile_in) + 2 * tile_f32 + 2 * param_block_bytes + (4 << 20)
    return int(min(max(limit, 16 << 20), 64 << 20))


# --------------------------------------------------------------------------
# Wrapper
# --------------------------------------------------------------------------
def unscale2d(x, weight, bias, *, max_tile_bytes=None):
    """y = (x - bias) / weight with weight/bias of shape (1, C, 1, 1)."""
    N, C, H, W = x.shape
    itemsize = jnp.dtype(x.dtype).itemsize
    if max_tile_bytes is None:
        max_tile_bytes = _default_max_tile_bytes()

    # Scalar math stays f32 regardless of x's precision; only the result casts.
    w_f32 = weight.reshape(C).astype(jnp.float32)
    b_f32 = bias.reshape(C).astype(jnp.float32)
    inv_w = 1.0 / w_f32                 # hoisted reciprocal (see correctness note)

    # Layout choice: lane-dense fallback when H*W pads badly to 128 lanes and
    # the extra per-lane param read (~4/(N*itemsize) of x traffic) is cheaper
    # than the lane waste of masked partial stores.
    L_sp = H * W
    padded = ((L_sp + 127) // 128) * 128
    lane_waste = 1.0 - (L_sp / padded)
    param_overhead = 4.0 / max(N * itemsize, 1)
    use_lane_fallback = lane_waste > max(0.10, param_overhead)

    if not use_lane_fallback:
        # Layout A: (N*C, H*W) rows, one (bias, inv_w) pair per row.
        R, L = N * C, H * W
        x2d = x.reshape(R, L)
        params = jnp.stack([jnp.tile(b_f32, N), jnp.tile(inv_w, N)], axis=1)  # (R, 2)
        TR, TL = _choose_tiles(R, L, itemsize, max_tile_bytes)
        kernel = _unscale_kernel_row_params
        param_spec = pl.BlockSpec((TR, 2), lambda i, j: (i, 0))
        param_block_bytes = TR * 2 * 4
    else:
        # Layout B: (N, C*H*W) rows — lane axis is thousands wide, stores stay
        # unmasked; params pre-expanded per lane position.
        R, L = N, C * H * W
        x2d = x.reshape(R, L)
        params = jnp.stack(
            [jnp.repeat(b_f32, H * W), jnp.repeat(inv_w, H * W)], axis=0)      # (2, L)
        TR, TL = _choose_tiles(R, L, itemsize, max_tile_bytes)
        kernel = _unscale_kernel_lane_params
        param_spec = pl.BlockSpec((2, TL), lambda i, j: (0, j))
        param_block_bytes = 2 * TL * 4

    grid = (pl.cdiv(R, TR), pl.cdiv(L, TL))

    out2d = pl.pallas_call(
        kernel,
        out_shape=jax.ShapeDtypeStruct((R, L), x.dtype),
        grid=grid,
        in_specs=[
            param_spec,                                    # merged (bias, 1/w)
            pl.BlockSpec((TR, TL), lambda i, j: (i, j)),   # x tile
        ],
        out_specs=pl.BlockSpec((TR, TL), lambda i, j: (i, j)),
        compiler_params=pltpu.CompilerParams(
            dimension_semantics=("parallel", "parallel"),  # pure elementwise
            vmem_limit_bytes=_vmem_limit_bytes(TR, TL, itemsize, param_block_bytes),
        ),
    )(params, x2d)

    return out2d.reshape(N, C, H, W)


# --------------------------------------------------------------------------
# Self-test
# --------------------------------------------------------------------------
if __name__ == "__main__":
    key = jax.random.PRNGKey(0)
    kx, kw, kb = jax.random.split(key, 3)

    # Case 1: required small shape — 128-friendly H*W, takes the (N*C, H*W) path.
    N, C, H, W = 2, 4, 16, 16
    x = jax.random.normal(kx, (N, C, H, W), dtype=jnp.float32)
    weight = jax.random.uniform(kw, (1, C, 1, 1), dtype=jnp.float32) + 0.5
    bias = jax.random.normal(kb, (1, C, 1, 1), dtype=jnp.float32)
    y = jax.block_until_ready(unscale2d(x, weight, bias))
    y_ref = (x - bias) / weight
    assert jnp.allclose(y, y_ref, atol=1e-5, rtol=1e-5), "mismatch (layout A)"

    # Case 2: odd spatial size (7x7) — exercises the lane-dense (N, C*H*W)
    # fallback and non-divisible edge blocks.
    N2, C2, H2, W2 = 2, 3, 7, 7
    x2 = jax.random.normal(kx, (N2, C2, H2, W2), dtype=jnp.float32)
    w2 = jax.random.uniform(kw, (1, C2, 1, 1), dtype=jnp.float32) + 0.5
    b2 = jax.random.normal(kb, (1, C2, 1, 1), dtype=jnp.float32)
    y2 = jax.block_until_ready(unscale2d(x2, w2, b2))
    y2_ref = (x2 - b2) / w2
    assert jnp.allclose(y2, y2_ref, atol=1e-5, rtol=1e-5), "mismatch (layout B)"

    print("KERNEL_OK")
</pallas_src>

<mosaic_0001>
module attributes {stable_mosaic.version = 11 : i64} {
  func.func @_unscale_kernel_row_params(%arg0: i32, %arg1: i32, %arg2: memref<8x2xf32, #tpu.memory_space<vmem>>, %arg3: memref<8x128xf32, #tpu.memory_space<vmem>>, %arg4: memref<8x128xf32, #tpu.memory_space<vmem>>) attributes {dimension_semantics = [#tpu.dimension_semantics<parallel>, #tpu.dimension_semantics<parallel>], iteration_bounds = array<i64: 1, 2>, scalar_prefetch = 0 : i64, scratch_operands = 0 : i64, tpu.core_type = #tpu.core_type<tc>, window_params = [{transform_indices = @transform_0, window_bounds = array<i64: 8, 2>}, {transform_indices = @transform_1, window_bounds = array<i64: 8, 128>}, {transform_indices = @transform_2, window_bounds = array<i64: 8, 128>}]} {
    %c0 = arith.constant 0 : index
    %c0_0 = arith.constant 0 : index
    %0 = vector.load %arg2[%c0, %c0_0] : memref<8x2xf32, #tpu.memory_space<vmem>>, vector<8x2xf32>
    %1 = vector.extract_strided_slice %0 {offsets = [0, 0], sizes = [8, 1], strides = [1, 1]} : vector<8x2xf32> to vector<8x1xf32>
    %2 = vector.extract_strided_slice %0 {offsets = [0, 1], sizes = [8, 1], strides = [1, 1]} : vector<8x2xf32> to vector<8x1xf32>
    %c0_1 = arith.constant 0 : index
    %c0_2 = arith.constant 0 : index
    %3 = vector.load %arg3[%c0_1, %c0_2] : memref<8x128xf32, #tpu.memory_space<vmem>>, vector<8x128xf32>
    %4 = vector.broadcast %1 : vector<8x1xf32> to vector<8x128xf32>
    %5 = arith.subf %3, %4 : vector<8x128xf32>
    %6 = vector.broadcast %2 : vector<8x1xf32> to vector<8x128xf32>
    %7 = arith.mulf %5, %6 : vector<8x128xf32>
    %c0_3 = arith.constant 0 : index
    %c0_4 = arith.constant 0 : index
    %8 = vector.load %arg4[%c0_3, %c0_4] : memref<8x128xf32, #tpu.memory_space<vmem>>, vector<8x128xf32>
    tpu.vector_store %arg4[%c0_3, %c0_4], %7 {strides = array<i32>} : memref<8x128xf32, #tpu.memory_space<vmem>>, vector<8x128xf32>,
    return
  }
  func.func @transform_0(%arg0: i32, %arg1: i32) -> (i32, i32) {
    %c0_i32 = arith.constant 0 : i32
    %c0_i32_0 = arith.constant 0 : i32
    return %arg0, %c0_i32 : i32, i32
  }
  func.func @transform_1(%arg0: i32, %arg1: i32) -> (i32, i32) {
    %c0_i32 = arith.constant 0 : i32
    return %arg0, %arg1 : i32, i32
  }
  func.func @transform_2(%arg0: i32, %arg1: i32) -> (i32, i32) {
    %c0_i32 = arith.constant 0 : i32
    return %arg0, %arg1 : i32, i32
  }
}

</mosaic_0001>

<bundles_post_ra>
// kernel: tpu_custom_call.1
= control target key start
LH: loop header
LB: loop body
LE: loop exit
PB: predicated region body
PF: predicated region fallthrough
CT: control target
= control target key end

     0   :  { %7 = vsyncpa [#allocation3], 0  ;;  %s659_s0 = inlined_call_operand.vmem [shape: f32[8,2], index: 0, kind: input, shape index: {}]   ;;  %s660_s1 = inlined_call_operand.hbm [shape: f32[8,256], index: 1, kind: input, shape index: {}]   ;;  %s661_s2 = inlined_call_operand.hbm [shape: f32[8,256], index: 2, kind: output, shape index: {}]  }
   0x1   :  { %9 = vsyncpa [#allocation3 + $0x1], 0 }
   0x2   :  { %10 = vsyncpa [#allocation4], 0 }
   0x3   :  { %12 = vsyncpa [#allocation4 + $0x1], 0  ;;  %s536_s9 = smov 0   ;;  %s538_s10 = smov 0  }
   0x4   :  { %s540_s11 = smov 0   ;;  %s542_s12 = smov 0  }
   0x5   :  { %s544_s13 = smov 0   ;;  %s546_s14 = smov 0  }
   0x6 LB: > { %s325_s15 = sadd.s32 4294967295, %s517_s14   ;;  %s326_s16 = sadd.s32 4294967294, %s517_s14   ;;  %s517_s14 = sphi %s546_s14, %s18_s14   ;;  %s513_s13 = sphi %s544_s13, %s670_s13   ;;  %s509_s12 = sphi %s542_s12, %s669_s12   ;;  %s505_s11 = sphi %s540_s11, %s668_s11   ;;  %s501_s10 = sphi %s538_s10, %s667_s10   ;;  %s497_s9 = sphi %s536_s9, %s666_s9  }
   0x7   : > { %s27_s17 = sadd.s32 1, %s513_s13  ;;  %s65_s18 = sadd.s32 1, %s505_s11 }
   0x8   : > { %p28_p0 = scmp.ge.s32.totalorder %s27_s17, 2  ;;  %p72_p1 = scmp.ne.s32.totalorder %s505_s11, %s501_s10 }
   0x9   : > { %p73_p2 = scmp.eq.s32.totalorder %s517_s14, 0  ;;  %p78_p3 = scmp.ne.s32.totalorder %s501_s10, %s497_s9 }
   0xa   : > { %s672_s17 = smov (%p28_p0, %s27_s17), 0  ;;  %p79_p5 = scmp.eq.s32.totalorder %s325_s15, 0 }
   0xb   : > { %p577_p4 = por %p73_p2, %p72_p1  ;;  %s61_s20 = ssub.s32 %s513_s13, %s672_s17 }
   0xc   : > { %p104_p6 = scmp.eq.s32.totalorder %s325_s15, 1  ;;  %p63_p7 = scmp.eq.s32.totalorder %s61_s20, 0 }
   0xd   : > { %p583_p8 = por %p79_p5, %p78_p3  ;;  %p110_p10 = scmp.eq.s32.totalorder %s326_s16, 1 }
   0xe   : > { %p587_p9 = por %p104_p6, %p72_p1  ;;  %p329_p12 = scmp.ge.s32.totalorder %s517_s14, 2 }
   0xf   : > { %s592_s23 = scalar_select %p63_p7, %s505_s11, %s65_s18  }
  0x10   : > { %p594_p11 = por %p110_p10, %p78_p3  ;;  %p351_p13 = scmp.lt.s32.totalorder %s517_s14, 2 }
  0x11   : > { %s137_s25 = sand.u32 1, %s505_s11   ;;  %s331_s27 = sshll.u32 %s513_s13, 3 }
  0x12   : > { %s330_s26 = sshll.u32 %s137_s25, 3  ;;  %s147_s30 = scalar_lea.hbm %s660_s1, %s331_s27 }
  0x13   : > { %s141_s3 = scalar_lea.vmem [#allocation2], %s330_s26  ;;  %s149_s5 = sshll.u32 %s147_s30, 4  ;;  %s150_s5 = int_to_ptr.hbm [resolvable:$true] %s149_s5 }
  0x14   : > { %s151_s4 = sshll.u32 %s141_s3, 4  ;;  %p344_p0 = pnand %p351_p13, %p577_p4  ;;  %s152_s4 = int_to_ptr.vmem [resolvable:$true] %s151_s4 }
  0x15   : > { %p332_p1 = scmp.ge.s32.totalorder %s517_s14, 1  ;;  %p156_p2 = scmp.lt.s32.totalorder %s517_s14, 3 }
  0x16   : > { %s138_s6 = scalar_lea.sflag [#allocation3], %s137_s25 }
  0x17   : > { %346 = dma.hbm_to_vmem [thread:$0]  (!%p344_p0), %s150_s5, 128, %s152_s4, %s138_s6  }
  0x18   : > { %p157_p3 = pnand %p332_p1, %p156_p2 }
  0x19   : > { %s610_s7 = sand.u32 (!%p157_p3), 1, %s501_s10  }
  0x1a   : > { %160 = sbr.rel (%p157_p3) target bundleno = 163 (0xa3), region = 28  ;;  %s333_s8 = sshll.u32 (!%p157_p3), %s610_s7, 3 }
  0x1b   : > { %s163_s15 = scalar_lea.sflag (!%p157_p3), [#allocation3], %s610_s7  ;;  %s166_s16 = scalar_lea.vmem (!%p157_p3), [#allocation2], %s333_s8 }
  0x1f   : > { %488 = dma.done.wait (%p583_p8), %s163_s15, 128  }
  0x20   : > { %490 = vsyncadd (%p583_p8), %s163_s15, 4294967168  ;;  %v519_v0 = vmov 0   ;;  %v196_v1 = vld [vmem:[%s659_s0] sm:$0xff]  ;;  %v520_v2 = vmov 1   ;;  %s336_s20 = sshll.u32 %s509_s12, 3  ;;  %s191_s21 = scalar_lea.vmem [#allocation5], %s333_s8 }
  0x21   : > { %403 = vset.pattern.permute.xlu0 %v519_v0  ;;  %s223_s27 = scalar_lea.hbm %s661_s2, %s336_s20  ;;  %v197_v4 = vld [vmem:[%s166_s16] sm:$0xff]  ;;  %s225_s28 = sshll.u32 %s191_s21, 4  ;;  %s226_s28 = int_to_ptr.vmem [resolvable:$true] %s225_s28 }
  0x22   : > { %200 = vperm.xlu0 %403, %v196_v1   ;;  %s227_s29 = sshll.u32 %s223_s27, 4  ;;  %s211_s30 = scalar_lea.sflag [#allocation4], %s610_s7  ;;  %s228_s29 = int_to_ptr.hbm [resolvable:$true] %s227_s29 }
  0x23   : > { %s449_s3 = sshra.s32 %s228_s29, 4  ;;  %s455_s6 = scalar_lea.hbm %s661_s2, 16  ;;  %s450_s3 = int_to_ptr.hbm [resolvable:$true] %s449_s3 }
  0x24   : > { %s451_s4 = scalar_lea.hbm %s450_s3, 8  ;;  %p456_p7 = scmp.lt.s32.totalorder %s450_s3, %s661_s2 }
  0x25   : > { %p452_p4 = scmp.ne.s32.totalorder %s450_s3, %s451_s4  ;;  %p457_p8 = scmp.lt.s32.totalorder %s455_s6, %s451_s4 }
  0x27   : > { %p453_p5 = pnand %p452_p4, %p587_p9  ;;  %p458_p10 = por %p457_p8, %p456_p7 }
  0x29   : > { %p454_p6 = pneg %p453_p5 }
  0x2a   : > { %404 = vset.pattern.permute.xlu0 %v520_v2 }
  0x2b   : > { %205 = vperm.xlu0 %404, %v196_v1   ;;  %p459_p13 = pnand %p458_p10, %p454_p6 }
  0x94   : > { %v201_v3 = vpop.permute.xlu0 %200 }
  0x95   : > { %v203_v5 = vsub.f32 %v197_v4, %v201_v3 }
  0x9d   : > { %v206_v6 = vpop.permute.xlu0 %205 }
  0x9e   : > { %v208_v7 = vmul.f32 %v206_v6, %v203_v5 }
  0xa0   : > { %209 = vst [vmem:[%s191_s21] sm:$0xff] %v208_v7 }
  0xa1   : > { %462 = shalt.err (!%p459_p13)
}
  0xa2   : > { %341 = dma.vmem_to_hbm [thread:$0]  (%p587_p9), %s226_s28, 128, %s228_s29, %s211_s30  }
  0xa3 PF: > { %s239_s7 = sand.u32 1, %s497_s9   ;;  %p348_p0 = pnand %p329_p12, %p594_p11 }
  0xa4   : > { %s240_s16 = scalar_lea.sflag [#allocation4], %s239_s7 }
  0xa5   : > { %p349_p1 = pneg %p348_p0 }
  0xa7   : > { %492 = dma.done.wait (%p349_p1), %s240_s16, 128  }
  0xa8   : > { %494 = vsyncadd (%p349_p1), %s240_s16, 4294967168  ;;  %s18_s14 = sadd.s32 1, %s517_s14   ;;  %s666_s9 = smov %s501_s10 }
  0xa9   : > { %p15_p2 = scmp.ge.s32.totalorder %s18_s14, 4   ;;  %s667_s10 = smov %s505_s11 }
  0xaa   : > { %s668_s11 = smov %s592_s23  ;;  %s669_s12 = smov %s513_s13 }
  0xab   : > { %s670_s13 = smov %s672_s17  ;;  %17 = sbr.rel (!%p15_p2) target bundleno = 6 (0x6), region = 76 }
  0xb0   :  { %246 = vsyncpa [#allocation3], 1 }
  0xb1   :  { %248 = vsyncpa [#allocation3 + $0x1], 1 }
  0xb2   :  { %249 = vsyncpa [#allocation4], 1 }
  0xb3   :  { %251 = vsyncpa [#allocation4 + $0x1], 1 }

</bundles_post_ra>
